<compile_context>
chip_gen: v5e
topology: v5e:2x2
jax: 0.10.0
libtpu: 0.0.40
codegen_flags: <defaults>
</compile_context>

<pallas_src>
import functools

import jax
import jax.numpy as jnp
from jax import lax
from jax.experimental import pallas as pl
from jax.experimental.pallas import tpu as pltpu

GAMMA = 2.0
ALPHA = 0.25

_LANE = 128
_SUB = 8
_NEUTRAL_PRED = -1e4      # sigmoid == 0 and BCE == 0 exactly (also fp16/bf16-safe magnitude)
_TILE_ROWS = 4096         # 4096 x 128 f32 = 2 MiB / input block; 2 in x 2 buf = 8 MiB VMEM
_SMALL_ROWS = 512         # <= 512 rows (256 KiB / operand): single-step whole-slab path
_NUM_CORES = 2            # leading 'parallel' grid axis (v7x has 2 TCs; no-op cost elsewhere)


def _round_up(v, m):
    return ((v + m - 1) // m) * m


def _elementwise_terms(x_raw, t_raw, gamma, gamma_is_2, c0, c1):
    """Per-element BCE and (alpha_factor * modulating).  c0 = 1-alpha, c1 = 2*alpha-1."""
    x = x_raw.astype(jnp.float32)
    t = t_raw.astype(jnp.float32)
    e = jnp.exp(-jnp.abs(x))                           # one exp shared by BCE and sigmoid
    bce = jnp.maximum(x, 0.0) - x * t + jnp.log1p(e)   # matches torch BCEWithLogitsLoss
    inv1pe = 1.0 / (1.0 + e)
    p = jnp.where(x >= 0.0, inv1pe, 1.0 - inv1pe)      # sigmoid(x) without a second exp
    alpha_factor = c0 + t * c1                         # t*a + (1-t)*(1-a), 2 VPU ops
    d = t - p
    if gamma_is_2:
        modulating = d * d                             # |d|**2 as one VPU mul (no pow)
    else:
        modulating = jnp.abs(d) ** gamma
    return bce, alpha_factor * modulating


def _focal_single_kernel(inv_n, gamma, gamma_is_2, c0, c1, pred_ref, true_ref, out_ref):
    # Whole problem in one grid step: no accumulators, no phase gating.
    bce, fm = _elementwise_terms(pred_ref[...], true_ref[...], gamma, gamma_is_2, c0, c1)
    out_ref[0, 0] = (jnp.sum(fm) * inv_n) * (jnp.sum(bce) * inv_n)


def _focal_tiled_kernel(rows, tile_rows, gamma, gamma_is_2, c0, c1,
                        pred_ref, true_ref, bce_out_ref, fm_out_ref):
    c = pl.program_id(0)          # parallel (core) axis
    s = pl.program_id(1)          # sequential step axis

    @pl.when(s == 0)
    def _():
        bce_out_ref[...] = jnp.zeros_like(bce_out_ref)
        fm_out_ref[...] = jnp.zeros_like(fm_out_ref)

    bce, fm = _elementwise_terms(pred_ref[...], true_ref[...], gamma, gamma_is_2, c0, c1)

    row_base = (c * pl.num_programs(1) + s) * tile_rows

    def accumulate(bce_v, fm_v):
        # Reduce the tile to a single vreg each (pure VPU adds; the reshape is
        # (8,128)-tile aligned so it is free).  Cross-lane reduce happens once, in the wrapper.
        bce_part = bce_v.reshape(tile_rows // _SUB, _SUB, _LANE).sum(axis=0)
        fm_part = fm_v.reshape(tile_rows // _SUB, _SUB, _LANE).sum(axis=0)
        bce_out_ref[0] += bce_part
        fm_out_ref[0] += fm_part

    @pl.when(row_base + tile_rows <= rows)          # full interior tile: no masking cost
    def _():
        accumulate(bce, fm)

    @pl.when(row_base + tile_rows > rows)           # ragged / out-of-range tile: mask rows
    def _():
        ridx = lax.broadcasted_iota(jnp.int32, (tile_rows, _LANE), 0)
        valid = (row_base + ridx) < rows
        accumulate(jnp.where(valid, bce, 0.0), jnp.where(valid, fm, 0.0))


def focal_loss(pred, true, gamma=GAMMA, alpha=ALPHA, *, tile_rows=None):
    assert pred.shape == true.shape
    total = pred.size
    inv_n = 1.0 / float(total)
    gamma_is_2 = float(gamma) == 2.0
    c0 = 1.0 - float(alpha)
    c1 = 2.0 * float(alpha) - 1.0

    # Keep the native floating dtype (halves HBM bytes for bf16); upcast happens in-kernel.
    if pred.dtype not in (jnp.dtype(jnp.float32), jnp.dtype(jnp.bfloat16)):
        pred = pred.astype(jnp.float32)
    if true.dtype not in (jnp.dtype(jnp.float32), jnp.dtype(jnp.bfloat16)):
        true = true.astype(jnp.float32)

    x = pred.reshape(-1)
    t = true.reshape(-1)

    # Only a <=127-element lane-tail pad remains; padded values contribute exactly 0.
    pad = (-total) % _LANE
    if pad:
        x = jnp.pad(x, (0, pad), constant_values=_NEUTRAL_PRED)
        t = jnp.pad(t, (0, pad), constant_values=0)
    rows = (total + pad) // _LANE
    x2 = x.reshape(rows, _LANE)
    t2 = t.reshape(rows, _LANE)

    if rows <= _SMALL_ROWS and tile_rows is None:
        # Small problem (the test shape is 16 x 128): one grid step, whole slab in VMEM.
        kernel = functools.partial(_focal_single_kernel, inv_n, float(gamma),
                                   gamma_is_2, c0, c1)
        out = pl.pallas_call(
            kernel,
            out_shape=jax.ShapeDtypeStruct((1, 1), jnp.float32),
            grid_spec=pltpu.PrefetchScalarGridSpec(
                num_scalar_prefetch=0,
                grid=(1,),
                in_specs=[
                    pl.BlockSpec((rows, _LANE), lambda i: (0, 0)),
                    pl.BlockSpec((rows, _LANE), lambda i: (0, 0)),
                ],
                out_specs=pl.BlockSpec(memory_space=pltpu.SMEM),
            ),
        )(x2, t2)
        return out[0, 0]

    # Large problem: fixed multi-MiB tiles, ragged tail handled in-kernel (no row padding).
    if tile_rows is None:
        tile_rows = min(_TILE_ROWS, _round_up(rows, _SUB))
    steps_total = pl.cdiv(rows, tile_rows)
    steps_per_core = pl.cdiv(steps_total, _NUM_CORES)
    last_block = steps_total - 1

    def in_map(c, s):
        # Clamp so fully-out-of-range grid points re-read the last valid block; their
        # contribution is masked to zero in-kernel (row_base uses the unclamped index).
        return (jnp.minimum(c * steps_per_core + s, last_block), 0)

    kernel = functools.partial(_focal_tiled_kernel, rows, tile_rows, float(gamma),
                               gamma_is_2, c0, c1)
    bce_parts, fm_parts = pl.pallas_call(
        kernel,
        out_shape=(
            jax.ShapeDtypeStruct((_NUM_CORES, _SUB, _LANE), jnp.float32),
            jax.ShapeDtypeStruct((_NUM_CORES, _SUB, _LANE), jnp.float32),
        ),
        grid_spec=pltpu.PrefetchScalarGridSpec(
            num_scalar_prefetch=0,
            grid=(_NUM_CORES, steps_per_core),
            in_specs=[
                pl.BlockSpec((tile_rows, _LANE), in_map),
                pl.BlockSpec((tile_rows, _LANE), in_map),
            ],
            out_specs=[
                pl.BlockSpec((1, _SUB, _LANE), lambda c, s: (c, 0, 0)),
                pl.BlockSpec((1, _SUB, _LANE), lambda c, s: (c, 0, 0)),
            ],
        ),
        compiler_params=pltpu.CompilerParams(
            dimension_semantics=("parallel", "arbitrary"),
        ),
    )(x2, t2)

    mean_bce = jnp.sum(bce_parts) * inv_n   # scalar bceloss
    mean_fm = jnp.sum(fm_parts) * inv_n     # mean of alpha_factor * modulating_factor
    return mean_fm * mean_bce               # = mean(alpha_f * mod_f * bceloss)


def focal_loss_ref(pred, true, gamma=GAMMA, alpha=ALPHA):
    x = pred.astype(jnp.float32)
    t = true.astype(jnp.float32)
    bce = jnp.mean(jnp.maximum(x, 0.0) - x * t + jnp.log1p(jnp.exp(-jnp.abs(x))))
    p = jax.nn.sigmoid(x)
    alpha_factor = t * alpha + (1.0 - t) * (1.0 - alpha)
    modulating = jnp.abs(t - p) ** gamma
    return jnp.mean(alpha_factor * modulating * bce)


if __name__ == "__main__":
    key = jax.random.PRNGKey(0)
    k1, k2 = jax.random.split(key)

    # 1) Small NCHW input (batch=2, channels=4, spatial=16x16): single-step path.
    pred = jax.random.normal(k1, (2, 4, 16, 16), dtype=jnp.float32)
    true = (jax.random.uniform(k2, (2, 4, 16, 16)) > 0.5).astype(jnp.float32)
    out = jax.block_until_ready(focal_loss(pred, true))
    ref = focal_loss_ref(pred, true)
    assert jnp.allclose(out, ref, rtol=1e-5, atol=1e-6), (out, ref)

    # 2) Ragged medium input: tiled path with lane-tail pad, row masking, clamped OOB block.
    k3, k4 = jax.random.split(k1)
    pred_m = jax.random.normal(k3, (3, 7, 55, 61), dtype=jnp.float32)
    true_m = (jax.random.uniform(k4, (3, 7, 55, 61)) > 0.5).astype(jnp.float32)
    out_m = jax.block_until_ready(focal_loss(pred_m, true_m))
    ref_m = focal_loss_ref(pred_m, true_m)
    assert jnp.allclose(out_m, ref_m, rtol=1e-5, atol=1e-6), (out_m, ref_m)

    # 3) Multi-step accumulation across both 'cores' (small tile override just for coverage).
    k5, k6 = jax.random.split(k2)
    pred_l = jax.random.normal(k5, (4, 8, 48, 50), dtype=jnp.float32)
    true_l = (jax.random.uniform(k6, (4, 8, 48, 50)) > 0.5).astype(jnp.float32)
    out_l = jax.block_until_ready(focal_loss(pred_l, true_l, tile_rows=128))
    ref_l = focal_loss_ref(pred_l, true_l)
    assert jnp.allclose(out_l, ref_l, rtol=1e-5, atol=1e-6), (out_l, ref_l)

    print("KERNEL_OK")
</pallas_src>

<mosaic_0001>
module attributes {stable_mosaic.version = 11 : i64} {
  func.func @_focal_single_kernel(%arg0: i32, %arg1: memref<16x128xf32, #tpu.memory_space<vmem>>, %arg2: memref<16x128xf32, #tpu.memory_space<vmem>>, %arg3: memref<1x1xf32, #tpu.memory_space<smem>>) attributes {dimension_semantics = [#tpu.dimension_semantics<arbitrary>], iteration_bounds = array<i64: 1>, scalar_prefetch = 0 : i64, scratch_operands = 0 : i64, tpu.core_type = #tpu.core_type<tc>, window_params = [{pipeline_mode = #tpu.pipeline_mode<synchronous>, transform_indices = @transform_0, window_bounds = array<i64: 16, 128>}, {pipeline_mode = #tpu.pipeline_mode<synchronous>, transform_indices = @transform_1, window_bounds = array<i64: 16, 128>}, {transform_indices = @transform_2, window_bounds = array<i64: 1, 1>}]} {
    %c0 = arith.constant 0 : index
    %c0_0 = arith.constant 0 : index
    %0 = vector.load %arg1[%c0, %c0_0] : memref<16x128xf32, #tpu.memory_space<vmem>>, vector<16x128xf32>
    %c0_1 = arith.constant 0 : index
    %c0_2 = arith.constant 0 : index
    %1 = vector.load %arg2[%c0_1, %c0_2] : memref<16x128xf32, #tpu.memory_space<vmem>>, vector<16x128xf32>
    %2 = math.absf %0 : vector<16x128xf32>
    %cst = arith.constant 0.000000e+00 : f32
    %3 = vector.broadcast %cst : f32 to vector<16x128xf32>
    %4 = arith.subf %3, %2 : vector<16x128xf32>
    %5 = math.exp %4 : vector<16x128xf32>
    %cst_3 = arith.constant 0.000000e+00 : f32
    %6 = vector.broadcast %cst_3 : f32 to vector<16x128xf32>
    %7 = arith.maximumf %0, %6 : vector<16x128xf32>
    %8 = arith.mulf %0, %1 : vector<16x128xf32>
    %9 = arith.subf %7, %8 : vector<16x128xf32>
    %10 = math.log1p %5 : vector<16x128xf32>
    %11 = arith.addf %9, %10 : vector<16x128xf32>
    %cst_4 = arith.constant 1.000000e+00 : f32
    %12 = vector.broadcast %cst_4 : f32 to vector<16x128xf32>
    %13 = arith.addf %12, %5 : vector<16x128xf32>
    %cst_5 = arith.constant 1.000000e+00 : f32
    %14 = vector.broadcast %cst_5 : f32 to vector<16x128xf32>
    %15 = arith.divf %14, %13 : vector<16x128xf32>
    %cst_6 = arith.constant 0.000000e+00 : f32
    %16 = vector.broadcast %cst_6 : f32 to vector<16x128xf32>
    %17 = arith.cmpf oge, %0, %16 : vector<16x128xf32>
    %cst_7 = arith.constant 1.000000e+00 : f32
    %18 = vector.broadcast %cst_7 : f32 to vector<16x128xf32>
    %19 = arith.subf %18, %15 : vector<16x128xf32>
    %20 = arith.select %17, %15, %19 : vector<16x128xi1>, vector<16x128xf32>
    %cst_8 = arith.constant -5.000000e-01 : f32
    %21 = vector.broadcast %cst_8 : f32 to vector<16x128xf32>
    %22 = arith.mulf %1, %21 : vector<16x128xf32>
    %cst_9 = arith.constant 7.500000e-01 : f32
    %23 = vector.broadcast %cst_9 : f32 to vector<16x128xf32>
    %24 = arith.addf %23, %22 : vector<16x128xf32>
    %25 = arith.subf %1, %20 : vector<16x128xf32>
    %26 = arith.mulf %25, %25 : vector<16x128xf32>
    %27 = arith.mulf %24, %26 : vector<16x128xf32>
    %28 = vector.shape_cast %27 : vector<16x128xf32> to vector<1x16x128xf32>
    %cst_10 = arith.constant dense<0.000000e+00> : vector<1xf32>
    %29 = vector.multi_reduction <add>, %28, %cst_10 [1, 2] : vector<1x16x128xf32> to vector<1xf32>
    %30 = vector.shape_cast %29 : vector<1xf32> to vector<1x1x1xf32>
    %31 = vector.extract %30[0, 0, 0] : f32 from vector<1x1x1xf32>
    %cst_11 = arith.constant 4.8828125E-4 : f32
    %32 = arith.mulf %31, %cst_11 : f32
    %33 = vector.shape_cast %11 : vector<16x128xf32> to vector<1x16x128xf32>
    %cst_12 = arith.constant dense<0.000000e+00> : vector<1xf32>
    %34 = vector.multi_reduction <add>, %33, %cst_12 [1, 2] : vector<1x16x128xf32> to vector<1xf32>
    %35 = vector.shape_cast %34 : vector<1xf32> to vector<1x1x1xf32>
    %36 = vector.extract %35[0, 0, 0] : f32 from vector<1x1x1xf32>
    %cst_13 = arith.constant 4.8828125E-4 : f32
    %37 = arith.mulf %36, %cst_13 : f32
    %38 = arith.mulf %32, %37 : f32
    %c0_14 = arith.constant 0 : index
    %c0_15 = arith.constant 0 : index
    %39 = memref.load %arg3[%c0_14, %c0_15] : memref<1x1xf32, #tpu.memory_space<smem>>
    memref.store %38, %arg3[%c0_14, %c0_15] : memref<1x1xf32, #tpu.memory_space<smem>>
    return
  }
  func.func @transform_0(%arg0: i32) -> (i32, i32) {
    %c0_i32 = arith.constant 0 : i32
    %c0_i32_0 = arith.constant 0 : i32
    %c0_i32_1 = arith.constant 0 : i32
    return %c0_i32, %c0_i32_0 : i32, i32
  }
  func.func @transform_1(%arg0: i32) -> (i32, i32) {
    %c0_i32 = arith.constant 0 : i32
    %c0_i32_0 = arith.constant 0 : i32
    %c0_i32_1 = arith.constant 0 : i32
    return %c0_i32, %c0_i32_0 : i32, i32
  }
  func.func @transform_2(%arg0: i32) -> (i32, i32) {
    %c0_i32 = arith.constant 0 : i32
    %c0_i32_0 = arith.constant 0 : i32
    %c0_i32_1 = arith.constant 0 : i32
    return %c0_i32, %c0_i32_0 : i32, i32
  }
}

</mosaic_0001>

<bundles_post_ra>
// kernel: tpu_custom_call.1
= control target key start
LH: loop header
LB: loop body
LE: loop exit
PB: predicated region body
PF: predicated region fallthrough
CT: control target
= control target key end

     0   :  { %7 = vsyncpa [#allocation3], 0  ;;  %s318_s0 = inlined_call_operand.hbm [shape: f32[16,128], index: 0, kind: input, shape index: {}]   ;;  %s319_s1 = inlined_call_operand.hbm [shape: f32[16,128], index: 1, kind: input, shape index: {}]   ;;  %s320_s2 = inlined_call_operand.hbm [shape: f32[1,1], index: 2, kind: output, shape index: {}]  }
   0x1   :  { %8 = vsyncpa [#allocation6], 0 }
   0x2   :  { %9 = vsyncpa [#allocation4], 0  ;;  %s14_s11 = sshll.u32 %s318_s0, 4  ;;  %s259_s12 = smov [#allocation2]   ;;  %s15_s11 = int_to_ptr.hbm [resolvable:$true] %s14_s11 }
   0x3   :  { %s16_s13 = sshll.u32 %s259_s12, 4  ;;  %s27_s16 = sshll.u32 %s319_s1, 4  ;;  %s17_s13 = int_to_ptr.vmem [resolvable:$true] %s16_s13  ;;  %s28_s16 = int_to_ptr.hbm [resolvable:$true] %s27_s16 }
   0x4   :  { %s260_s17 = smov 128   ;;  %s261_s18 = smov 8  }
   0x5   :  { %22 = dma.hbm_to_vmem [thread:$0]  %s15_s11, 256, %s17_s13, [#allocation3], %s260_s17, %s260_s17, %s261_s18  }
   0x6   :  { %s262_s19 = smov [#allocation5]  }
   0x7   :  { %s29_s20 = sshll.u32 %s262_s19, 4  ;;  %s30_s20 = int_to_ptr.vmem [resolvable:$true] %s29_s20 }
   0x8   :  { %35 = dma.hbm_to_vmem [thread:$0]  %s28_s16, 256, %s30_s20, [#allocation6], %s260_s17, %s260_s17, %s261_s18  }
   0x9   :  { %253 = dma.done.wait [#allocation3], 256  }
   0xa   :  { %254 = vsyncadd [#allocation3], 4294967040 }
   0xb   :  { %255 = dma.done.wait [#allocation6], 256  }
   0xc   :  { %256 = vsyncadd [#allocation6], 4294967040  ;;  %v285_v0 = vld [vmem:[#allocation2] sm:$0xff]  ;;  %v287_v1 = vld [vmem:[#allocation2 + $0x8] sm:$0xff]  ;;  %s160_s22 = sshll.u32 %s320_s2, 4  ;;  %s263_s27 = smov [#allocation7]   ;;  %s161_s22 = int_to_ptr.hbm [resolvable:$true] %s160_s22 }
   0xd   :  { %v48_v2 = vand.u32 2147483647, %v285_v0  ;;  %v49_v3 = vand.u32 2147483647, %v287_v1  ;;  %v46_v22 = vld [vmem:[#allocation5] sm:$0xff]  ;;  %v47_v24 = vld [vmem:[#allocation5 + $0x8] sm:$0xff] }
   0xe   :  { %v120_v32 = vmul.f32 -0.5, %v46_v22  ;;  %v121_v35 = vmul.f32 -0.5, %v47_v24  ;;  %vm114_vm8 = vcmp.ge.f32.partialorder %v285_v0, 0.0  ;;  %vm115_vm9 = vcmp.ge.f32.partialorder %v287_v1, 0.0 }
   0xf   :  { %v50_v4 = vsub.f32 0.0, %v48_v2  ;;  %v51_v5 = vsub.f32 0.0, %v49_v3  ;;  %v56_v52 = vmax.f32 %v285_v0, 0.0  ;;  %v57_v53 = vmax.f32 %v287_v1, 0.0 }
  0x10   :  { %v122_v43 = vadd.f32 0.75, %v120_v32  ;;  %v123_v47 = vadd.f32 0.75, %v121_v35  ;;  %v58_v55 = vmul.f32 %v46_v22, %v285_v0  ;;  %v59_v56 = vmul.f32 %v47_v24, %v287_v1 }
  0x11   :  { %v52_v6 = vmul.f32 1.442695, %v50_v4  ;;  %v54_v7 = vmul.f32 1.442695, %v51_v5 }
  0x12   :  { %v60_v3 = vsub.f32 %v56_v52, %v58_v55  ;;  %v61_v4 = vsub.f32 %v57_v53, %v59_v56 }
  0x13   :  { %181 = vpow2.f32 %v52_v6 }
  0x14   :  { %183 = vpow2.f32 %v54_v7 }
  0x19   :  { %v291_v8 = vpop.eup %181 }
  0x1a   :  { %v293_v9 = vpop.eup %183  ;;  %v62_v10 = vadd.f32 1.0, %v291_v8  ;;  %v65_v28 = vmul.f32 -0.5, %v291_v8  ;;  %v68_v48 = vand.u32 2147483647, %v291_v8 }
  0x1b   :  { %v71_v11 = vadd.f32 1.0, %v293_v9  ;;  %v74_v33 = vmul.f32 -0.5, %v293_v9  ;;  %v77_v49 = vand.u32 2147483647, %v293_v9 }
  0x1c   :  { %185 = vrcp.f32 %v62_v10  ;;  %vm89_vm0 = vweird.f32 %v62_v10  ;;  %v95_v15 = vand.u32 2147483648, %v62_v10  ;;  %v93_v18 = vand.u32 2147483647, %v62_v10 }
  0x1d   :  { %187 = vrcp.f32 %v71_v11  ;;  %v110_v19 = vand.u32 2147483648, %v71_v11  ;;  %vm104_vm2 = vweird.f32 %v71_v11  ;;  %v108_v21 = vand.u32 2147483647, %v71_v11 }
  0x1e   :  { %v96_v26 = vor.u32 1.1754944e-38, %v95_v15  ;;  %189 = vlog2.f32 %v62_v10  ;;  %vm94_vm5 = vcmp.eq.f32.partialorder %v93_v18, 8.507059e+37  ;;  %v66_v40 = vadd.f32 1.0, %v65_v28 }
  0x1f   :  { %v111_v30 = vor.u32 1.1754944e-38, %v110_v19  ;;  %191 = vlog2.f32 %v71_v11  ;;  %vm109_vm7 = vcmp.eq.f32.partialorder %v108_v21, 8.507059e+37  ;;  %v75_v44 = vadd.f32 1.0, %v74_v33 }
  0x20   :  { %v67_v57 = vmul.f32 %v291_v8, %v66_v40  ;;  %vm69_vm10 = vcmp.lt.f32.partialorder %v68_v48, 0.0004427343  ;;  %vm78_vm11 = vcmp.lt.f32.partialorder %v77_v49, 0.0004427343 }
  0x21   :  { %v76_v61 = vmul.f32 %v293_v9, %v75_v44 }
  0x22   :  { %v186_v12 = vpop.eup %185 }
  0x23   :  { %v188_v13 = vpop.eup %187  ;;  %v85_v14 = vmul.f32 %v186_v12, %v62_v10  ;;  %vm90_vm1 = vweird.f32 %v186_v12 }
  0x24   :  { %v100_v16 = vmul.f32 %v188_v13, %v71_v11  ;;  %vm105_vm3 = vweird.f32 %v188_v13  ;;  %vm297_vm4 = vmor %vm89_vm0, %vm90_vm1  ;;  %v190_v41 = vpop.eup %189 }
  0x25   :  { %v86_v17 = vsub.f32 1.0, %v85_v14  ;;  %vm106_vm6 = vmor %vm104_vm2, %vm105_vm3  ;;  %v192_v45 = vpop.eup %191  ;;  %v64_v59 = vmul.f32 0.6931472, %v190_v41 }
  0x26   :  { %v101_v20 = vsub.f32 1.0, %v100_v16  ;;  %v73_v60 = vmul.f32 0.6931472, %v192_v45 }
  0x27   :  { %v87_v23 = vmul.f32 %v186_v12, %v86_v17  ;;  %v70_v5 = vsel %vm69_vm10, %v67_v57, %v64_v59 }
  0x28   :  { %v102_v27 = vmul.f32 %v188_v13, %v101_v20  ;;  %v79_v6 = vsel %vm78_vm11, %v76_v61, %v73_v60  ;;  %v80_v0 = vadd.f32 %v70_v5, %v60_v3 }
  0x29   :  { %v88_v29 = vadd.f32 %v186_v12, %v87_v23  ;;  %v81_v1 = vadd.f32 %v79_v6, %v61_v4 }
  0x2a   :  { %v103_v31 = vadd.f32 %v188_v13, %v102_v27 }
  0x2b   :  { %v92_v34 = vsel %vm297_vm4, %v186_v12, %v88_v29  ;;  %v141_v10 = vadd.f32 %v81_v1, %v80_v0 }
  0x2c   :  { %v97_v36 = vsel %vm94_vm5, %v96_v26, %v92_v34  ;;  %v107_v37 = vsel %vm106_vm6, %v188_v13, %v103_v31 }
  0x2d   :  { %v112_v38 = vsel %vm109_vm7, %v111_v30, %v107_v37  ;;  %v116_v39 = vsub.f32 1.0, %v97_v36 }
  0x2e   :  { %v117_v42 = vsub.f32 1.0, %v112_v38 }
  0x2f   :  { %v118_v46 = vsel %vm114_vm8, %v97_v36, %v116_v39 }
  0x30   :  { %v119_v50 = vsel %vm115_vm9, %v112_v38, %v117_v42  ;;  %v124_v51 = vsub.f32 %v46_v22, %v118_v46 }
  0x31   :  { %v125_v54 = vsub.f32 %v47_v24, %v119_v50 }
  0x32   :  { %v126_v58 = vmul.f32 %v124_v51, %v124_v51 }
  0x33   :  { %v127_v62 = vmul.f32 %v125_v54, %v125_v54 }
  0x34   :  { %v128_v63 = vmul.f32 %v126_v58, %v122_v43 }
  0x35   :  { %v129_v2 = vmul.f32 %v127_v62, %v123_v47 }
  0x37   :  { %v130_v7 = vadd.f32 %v129_v2, %v128_v63 }
  0x39   :  { %131 = vadd.xlane.f32.xlu0 %v130_v7 }
  0x41   :  { %142 = vadd.xlane.f32.xlu0 %v141_v10 }
  0xac   :  { %v132_v8 = vpop.xlane.xlu0 %131 }
  0xad   :  { %v133_v11 = vrot.slane %v132_v8, 4 }
  0xaf   :  { %v134_v12 = vadd.f32 %v133_v11, %v132_v8 }
  0xb1   :  { %v135_v13 = vrot.slane %v134_v12, 2 }
  0xb3   :  { %v136_v9 = vadd.f32 %v135_v13, %v134_v12 }
  0xb4   :  { %v143_v14 = vpop.xlane.xlu0 %142 }
  0xb5   :  { %v144_v15 = vrot.slane %v143_v14, 4  ;;  %v137_v16 = vrot.slane %v136_v9, 1 }
  0xb7   :  { %v145_v17 = vadd.f32 %v144_v15, %v143_v14  ;;  %v138_v18 = vadd.f32 %v137_v16, %v136_v9 }
  0xb9   :  { %v146_v19 = vrot.slane %v145_v17, 2  ;;  %172 = vpush %v138_v18 }
  0xbb   :  { %v147_v20 = vadd.f32 %v146_v19, %v145_v17 }
  0xbd   :  { %v148_v21 = vrot.slane %v147_v20, 1 }
  0xbf   :  { %v149_v22 = vadd.f32 %v148_v21, %v147_v20 }
  0xc1   :  { %174 = vpush %v149_v22 }
  0xea   :  { %s173_s0 = spop %172 }
  0xeb   :  { %s140_s23 = smul.f32 0.00048828125, %s173_s0 }
  0xf2   :  { %s175_s24 = spop %174 }
  0xf3   :  { %s151_s25 = smul.f32 0.00048828125, %s175_s24 }
  0xf5   :  { %s152_s26 = smul.f32 %s151_s25, %s140_s23 }
  0xf7   :  { %154 = sst [smem:[#allocation7]] %s152_s26 }
  0xf8   :  { %163 = dma.smem_to_hbm %s263_s27, 16, %s161_s22, [#allocation4]  }
  0xf9   :  { %257 = dma.done.wait [#allocation4], 16  }
  0xfa   :  { %258 = vsyncadd [#allocation4], 4294967280 }
  0xfb   :  { %168 = sfence }
  0xfc   :  { %169 = vsyncpa [#allocation3], 1 }
  0xfd   :  { %170 = vsyncpa [#allocation6], 1 }
  0xfe   :  { %171 = vsyncpa [#allocation4], 1 }

</bundles_post_ra>
